<compile_context>
chip_gen: v6e
topology: v6e:2x2x1
jax: 0.10.0
libtpu: 0.0.40
codegen_flags: <defaults>
</compile_context>

<pallas_src>
import math

import jax
import jax.numpy as jnp
from jax import lax
from jax.experimental import pallas as pl
from jax.experimental.pallas import tpu as pltpu

NUM_GROUPS = 32
EPS = 1e-5


def _pick_tile(n, target):
    """Largest multiple-of-8 divisor of n that is <= target (fallback: n itself)."""
    t = min(target, n)
    while t > 0:
        if n % t == 0:
            return t
        t -= 8
    return n


# ---------------- Stage 1: GroupNorm-apply + qkv 1x1 conv ----------------
def _qkv_kernel(x_ref, a_ref, bq_ref, bk_ref, bv_ref,
                wq_ref, wk_ref, wv_ref, q_ref, k_ref, v_ref):
    # GroupNorm: n = x * a + shift; the shift term is pre-folded into bq/bk/bv.
    xa = (x_ref[...] * a_ref[...]).astype(jnp.bfloat16)
    q_ref[...] = (jnp.dot(xa, wq_ref[...], preferred_element_type=jnp.float32)
                  + bq_ref[...]).astype(q_ref.dtype)
    k_ref[...] = (jnp.dot(xa, wk_ref[...], preferred_element_type=jnp.float32)
                  + bk_ref[...]).astype(k_ref.dtype)
    v_ref[...] = (jnp.dot(xa, wv_ref[...], preferred_element_type=jnp.float32)
                  + bv_ref[...]).astype(v_ref.dtype)


# ------- Stage 2: flash attention (online softmax) + proj + residual -------
def _flash_attn_kernel(q_ref, k_ref, v_ref, xres_ref, wp_ref, bp_ref,
                       o_ref, m_sc, l_sc, acc_sc):
    kv = pl.program_id(2)

    @pl.when(kv == 0)
    def _():
        m_sc[...] = jnp.full_like(m_sc, -jnp.inf)
        l_sc[...] = jnp.zeros_like(l_sc)
        acc_sc[...] = jnp.zeros_like(acc_sc)

    # q already carries the 1/sqrt(C) scale. Contract last axes of q and k
    # directly (no k.T materialization / XLU transpose).
    s = lax.dot_general(q_ref[...], k_ref[...],
                        dimension_numbers=(((1,), (1,)), ((), ())),
                        preferred_element_type=jnp.float32)          # (TQ, TKV) f32

    m_prev = m_sc[...]
    m_new = jnp.maximum(m_prev, jnp.max(s, axis=-1, keepdims=True))
    alpha = jnp.exp(m_prev - m_new)
    p = jnp.exp(s - m_new)                                           # unnormalized
    l_sc[...] = alpha * l_sc[...] + jnp.sum(p, axis=-1, keepdims=True)
    acc_sc[...] = alpha * acc_sc[...] + jnp.dot(
        p.astype(jnp.bfloat16), v_ref[...], preferred_element_type=jnp.float32)
    m_sc[...] = m_new

    @pl.when(kv == pl.num_programs(2) - 1)
    def _():
        # Deferred softmax normalization (single EUP reciprocal), proj, residual.
        h = acc_sc[...] * pl.reciprocal(l_sc[...], approx=True)       # (TQ, C) f32
        proj = jnp.dot(h.astype(jnp.bfloat16), wp_ref[...],
                       preferred_element_type=jnp.float32) + bp_ref[...]
        o_ref[...] = xres_ref[...] + proj


def attn_block(x_nchw, params, *, proj_tile=256, q_tile=128, kv_tile=128):
    B, C, H, W = x_nchw.shape
    assert C % NUM_GROUPS == 0
    HW = H * W
    gs = C // NUM_GROUPS
    scale = 1.0 / math.sqrt(C)

    # NCHW -> channels-last tokens (B, HW, C); 1x1 convs become matmuls.
    x = jnp.transpose(x_nchw, (0, 2, 3, 1)).reshape(B, HW, C)

    # ---- Stage 0: GroupNorm stats prepass (cheap XLA reduce; two-pass variance) ----
    xg = x.reshape(B, HW, NUM_GROUPS, gs)
    mean_g = jnp.mean(xg, axis=(1, 3))                                   # (B, G)
    var_g = jnp.mean(jnp.square(xg - mean_g[:, None, :, None]), axis=(1, 3))
    inv_std_g = lax.rsqrt(var_g + EPS)
    mean_c = jnp.repeat(mean_g, gs, axis=1)                              # (B, C)
    inv_std_c = jnp.repeat(inv_std_g, gs, axis=1)                        # (B, C)

    gamma = params["gamma"].reshape(1, C).astype(jnp.float32)
    beta = params["beta"].reshape(1, C).astype(jnp.float32)
    a = inv_std_c * gamma                       # per-(batch, channel) scale
    shift = beta - mean_c * a                   # per-(batch, channel) shift

    # ---- weight prep: fold 1/sqrt(C) into Wq/bq; fold GroupNorm shift into biases ----
    w_qkv_t = params["wqkv"].reshape(3 * C, C).T.astype(jnp.float32)     # (C, 3C)
    b_qkv = params["bqkv"].reshape(3 * C).astype(jnp.float32)
    wq = w_qkv_t[:, 0 * C:1 * C] * scale
    wk = w_qkv_t[:, 1 * C:2 * C]
    wv = w_qkv_t[:, 2 * C:3 * C]
    bq = (shift @ wq + b_qkv[0 * C:1 * C] * scale).reshape(B, 1, C)
    bk = (shift @ wk + b_qkv[1 * C:2 * C]).reshape(B, 1, C)
    bv = (shift @ wv + b_qkv[2 * C:3 * C]).reshape(B, 1, C)

    w_proj_t = params["wproj"].reshape(C, C).T.astype(jnp.bfloat16)      # (C, C)
    b_proj = params["bproj"].reshape(1, C).astype(jnp.float32)
    a3 = a.reshape(B, 1, C)

    # ---- Stage 1: GroupNorm apply + qkv projection (tiled over HW) ----
    t1 = _pick_tile(HW, proj_tile)
    n1 = HW // t1
    q, k, v = pl.pallas_call(
        _qkv_kernel,
        out_shape=(jax.ShapeDtypeStruct((B, HW, C), jnp.bfloat16),
                   jax.ShapeDtypeStruct((B, HW, C), jnp.bfloat16),
                   jax.ShapeDtypeStruct((B, HW, C), jnp.bfloat16)),
        grid=(B, n1),
        in_specs=[
            pl.BlockSpec((None, t1, C), lambda b, i: (b, i, 0)),   # x
            pl.BlockSpec((None, 1, C), lambda b, i: (b, 0, 0)),    # GroupNorm scale a
            pl.BlockSpec((None, 1, C), lambda b, i: (b, 0, 0)),    # folded bias q
            pl.BlockSpec((None, 1, C), lambda b, i: (b, 0, 0)),    # folded bias k
            pl.BlockSpec((None, 1, C), lambda b, i: (b, 0, 0)),    # folded bias v
            pl.BlockSpec((C, C), lambda b, i: (0, 0)),             # Wq (bf16, pre-scaled)
            pl.BlockSpec((C, C), lambda b, i: (0, 0)),             # Wk (bf16)
            pl.BlockSpec((C, C), lambda b, i: (0, 0)),             # Wv (bf16)
        ],
        out_specs=(
            pl.BlockSpec((None, t1, C), lambda b, i: (b, i, 0)),
            pl.BlockSpec((None, t1, C), lambda b, i: (b, i, 0)),
            pl.BlockSpec((None, t1, C), lambda b, i: (b, i, 0)),
        ),
        compiler_params=pltpu.CompilerParams(
            dimension_semantics=("parallel", "parallel")),
    )(x, a3, bq, bk, bv,
      wq.astype(jnp.bfloat16), wk.astype(jnp.bfloat16), wv.astype(jnp.bfloat16))

    # ---- Stage 2: flash attention + proj + residual ----
    tq = _pick_tile(HW, q_tile)
    tkv = _pick_tile(HW, kv_tile)
    nq = HW // tq
    nkv = HW // tkv
    out = pl.pallas_call(
        _flash_attn_kernel,
        out_shape=jax.ShapeDtypeStruct((B, HW, C), jnp.float32),
        grid=(B, nq, nkv),
        in_specs=[
            pl.BlockSpec((None, tq, C), lambda b, i, j: (b, i, 0)),    # q tile
            pl.BlockSpec((None, tkv, C), lambda b, i, j: (b, j, 0)),   # k tile
            pl.BlockSpec((None, tkv, C), lambda b, i, j: (b, j, 0)),   # v tile
            pl.BlockSpec((None, tq, C), lambda b, i, j: (b, i, 0)),    # x (residual)
            pl.BlockSpec((C, C), lambda b, i, j: (0, 0)),              # Wproj (bf16)
            pl.BlockSpec((1, C), lambda b, i, j: (0, 0)),              # bproj
        ],
        out_specs=pl.BlockSpec((None, tq, C), lambda b, i, j: (b, i, 0)),
        scratch_shapes=[
            pltpu.VMEM((tq, 1), jnp.float32),    # running max m
            pltpu.VMEM((tq, 1), jnp.float32),    # running denom l
            pltpu.VMEM((tq, C), jnp.float32),    # output accumulator
        ],
        compiler_params=pltpu.CompilerParams(
            dimension_semantics=("parallel", "parallel", "arbitrary")),
    )(q, k, v, x, w_proj_t, b_proj)

    return jnp.transpose(out.reshape(B, H, W, C), (0, 3, 1, 2))


def attn_block_ref(x, params):
    """Pure-JAX f32 reference reproducing the PyTorch forward (NCHW)."""
    B, C, H, W = x.shape
    gs = C // NUM_GROUPS
    xr = x.reshape(B, NUM_GROUPS, gs, H, W)
    mean = xr.mean(axis=(2, 3, 4), keepdims=True)
    var = xr.var(axis=(2, 3, 4), keepdims=True)
    n = ((xr - mean) / jnp.sqrt(var + EPS)).reshape(B, C, H, W)
    n = n * params["gamma"].reshape(1, C, 1, 1) + params["beta"].reshape(1, C, 1, 1)
    qkv = (jnp.einsum('oc,bchw->bohw', params["wqkv"].reshape(3 * C, C), n)
           + params["bqkv"].reshape(1, 3 * C, 1, 1))
    qkv = qkv.reshape(B, 3, C, H * W).transpose(0, 1, 3, 2)   # (B, 3, HW, C)
    q, k, v = qkv[:, 0], qkv[:, 1], qkv[:, 2]
    s = jnp.einsum('bqc,bkc->bqk', q, k) / math.sqrt(C)
    p = jax.nn.softmax(s, axis=-1)
    h = jnp.einsum('bqk,bkc->bqc', p, v)
    h = h.transpose(0, 2, 1).reshape(B, C, H, W)
    proj = (jnp.einsum('oc,bchw->bohw', params["wproj"].reshape(C, C), h)
            + params["bproj"].reshape(1, C, 1, 1))
    return x + proj


if __name__ == "__main__":
    # Small but multi-tile: HW = 256 -> 2 query tiles x 2 kv tiles per batch.
    B, C, H, W = 2, 64, 16, 16   # C must be divisible by 32 (GroupNorm groups)
    key = jax.random.PRNGKey(0)
    k1, k2, k3, k4, k5, k6, k7 = jax.random.split(key, 7)

    x = jax.random.normal(k1, (B, C, H, W), jnp.float32)
    params = {
        "gamma": 1.0 + 0.1 * jax.random.normal(k2, (C,), jnp.float32),
        "beta": 0.1 * jax.random.normal(k3, (C,), jnp.float32),
        "wqkv": jax.random.normal(k4, (3 * C, C, 1, 1), jnp.float32) / math.sqrt(C),
        "bqkv": 0.01 * jax.random.normal(k5, (3 * C,), jnp.float32),
        "wproj": jax.random.normal(k6, (C, C, 1, 1), jnp.float32) / math.sqrt(C),
        "bproj": 0.01 * jax.random.normal(k7, (C,), jnp.float32),
    }

    out = jax.block_until_ready(attn_block(x, params))
    ref = attn_block_ref(x, params)
    err = float(jnp.max(jnp.abs(out - ref)))
    assert out.shape == (B, C, H, W) and out.dtype == jnp.float32
    # bf16 matmul inputs (f32 accumulation) -> slightly looser tolerance than pure f32.
    assert jnp.allclose(out, ref, atol=2e-2, rtol=2e-2), f"max abs err {err}"
    print("KERNEL_OK")
</pallas_src>

<mosaic_0001>
module attributes {stable_mosaic.version = 11 : i64} {
  func.func @_qkv_kernel(%arg0: i32, %arg1: i32, %arg2: memref<1x256x64xf32, #tpu.memory_space<vmem>>, %arg3: memref<1x1x64xf32, #tpu.memory_space<vmem>>, %arg4: memref<1x1x64xf32, #tpu.memory_space<vmem>>, %arg5: memref<1x1x64xf32, #tpu.memory_space<vmem>>, %arg6: memref<1x1x64xf32, #tpu.memory_space<vmem>>, %arg7: memref<64x64xbf16, #tpu.memory_space<vmem>>, %arg8: memref<64x64xbf16, #tpu.memory_space<vmem>>, %arg9: memref<64x64xbf16, #tpu.memory_space<vmem>>, %arg10: memref<1x256x64xbf16, #tpu.memory_space<vmem>>, %arg11: memref<1x256x64xbf16, #tpu.memory_space<vmem>>, %arg12: memref<1x256x64xbf16, #tpu.memory_space<vmem>>) attributes {dimension_semantics = [#tpu.dimension_semantics<parallel>, #tpu.dimension_semantics<parallel>], iteration_bounds = array<i64: 2, 1>, scalar_prefetch = 0 : i64, scratch_operands = 0 : i64, tpu.core_type = #tpu.core_type<tc>, window_params = [{transform_indices = @transform_0, window_bounds = array<i64: 1, 256, 64>}, {transform_indices = @transform_1, window_bounds = array<i64: 1, 1, 64>}, {transform_indices = @transform_2, window_bounds = array<i64: 1, 1, 64>}, {transform_indices = @transform_3, window_bounds = array<i64: 1, 1, 64>}, {transform_indices = @transform_4, window_bounds = array<i64: 1, 1, 64>}, {pipeline_mode = #tpu.pipeline_mode<synchronous>, transform_indices = @transform_5, window_bounds = array<i64: 64, 64>}, {pipeline_mode = #tpu.pipeline_mode<synchronous>, transform_indices = @transform_6, window_bounds = array<i64: 64, 64>}, {pipeline_mode = #tpu.pipeline_mode<synchronous>, transform_indices = @transform_7, window_bounds = array<i64: 64, 64>}, {transform_indices = @transform_8, window_bounds = array<i64: 1, 256, 64>}, {transform_indices = @transform_9, window_bounds = array<i64: 1, 256, 64>}, {transform_indices = @transform_10, window_bounds = array<i64: 1, 256, 64>}]} {
    %c0 = arith.constant 0 : index
    %c0_0 = arith.constant 0 : index
    %c0_1 = arith.constant 0 : index
    %0 = vector.load %arg2[%c0, %c0_0, %c0_1] : memref<1x256x64xf32, #tpu.memory_space<vmem>>, vector<1x256x64xf32>
    %1 = vector.shape_cast %0 : vector<1x256x64xf32> to vector<256x64xf32>
    %c0_2 = arith.constant 0 : index
    %c0_3 = arith.constant 0 : index
    %c0_4 = arith.constant 0 : index
    %2 = vector.load %arg3[%c0_2, %c0_3, %c0_4] : memref<1x1x64xf32, #tpu.memory_space<vmem>>, vector<1x1x64xf32>
    %3 = vector.shape_cast %2 : vector<1x1x64xf32> to vector<1x64xf32>
    %4 = vector.broadcast %3 : vector<1x64xf32> to vector<256x64xf32>
    %5 = arith.mulf %1, %4 : vector<256x64xf32>
    %6 = arith.truncf %5 : vector<256x64xf32> to vector<256x64xbf16>
    %c0_5 = arith.constant 0 : index
    %c0_6 = arith.constant 0 : index
    %7 = vector.load %arg7[%c0_5, %c0_6] : memref<64x64xbf16, #tpu.memory_space<vmem>>, vector<64x64xbf16>
    %cst = arith.constant dense<0.000000e+00> : vector<256x64xf32>
    %8 = tpu.matmul %6, %7, %cst {dimension_numbers = #tpu.dot_dimension_numbers<[1], [0], [0], [1], [0, 0, 1, 1], [], []>} : vector<256x64xbf16>, vector<64x64xbf16>, vector<256x64xf32> -> vector<256x64xf32>
    %c0_7 = arith.constant 0 : index
    %c0_8 = arith.constant 0 : index
    %c0_9 = arith.constant 0 : index
    %9 = vector.load %arg4[%c0_7, %c0_8, %c0_9] : memref<1x1x64xf32, #tpu.memory_space<vmem>>, vector<1x1x64xf32>
    %10 = vector.shape_cast %9 : vector<1x1x64xf32> to vector<1x64xf32>
    %11 = vector.broadcast %10 : vector<1x64xf32> to vector<256x64xf32>
    %12 = arith.addf %8, %11 : vector<256x64xf32>
    %13 = arith.truncf %12 : vector<256x64xf32> to vector<256x64xbf16>
    %c0_10 = arith.constant 0 : index
    %c0_11 = arith.constant 0 : index
    %c0_12 = arith.constant 0 : index
    %14 = vector.load %arg10[%c0_10, %c0_11, %c0_12] : memref<1x256x64xbf16, #tpu.memory_space<vmem>>, vector<1x256x64xbf16>
    %15 = vector.shape_cast %14 : vector<1x256x64xbf16> to vector<256x64xbf16>
    %16 = vector.shape_cast %13 : vector<256x64xbf16> to vector<1x256x64xbf16>
    tpu.vector_store %arg10[%c0_10, %c0_11, %c0_12], %16 {strides = array<i32>} : memref<1x256x64xbf16, #tpu.memory_space<vmem>>, vector<1x256x64xbf16>,
    %c0_13 = arith.constant 0 : index
    %c0_14 = arith.constant 0 : index
    %17 = vector.load %arg8[%c0_13, %c0_14] : memref<64x64xbf16, #tpu.memory_space<vmem>>, vector<64x64xbf16>
    %cst_15 = arith.constant dense<0.000000e+00> : vector<256x64xf32>
    %18 = tpu.matmul %6, %17, %cst_15 {dimension_numbers = #tpu.dot_dimension_numbers<[1], [0], [0], [1], [0, 0, 1, 1], [], []>} : vector<256x64xbf16>, vector<64x64xbf16>, vector<256x64xf32> -> vector<256x64xf32>
    %c0_16 = arith.constant 0 : index
    %c0_17 = arith.constant 0 : index
    %c0_18 = arith.constant 0 : index
    %19 = vector.load %arg5[%c0_16, %c0_17, %c0_18] : memref<1x1x64xf32, #tpu.memory_space<vmem>>, vector<1x1x64xf32>
    %20 = vector.shape_cast %19 : vector<1x1x64xf32> to vector<1x64xf32>
    %21 = vector.broadcast %20 : vector<1x64xf32> to vector<256x64xf32>
    %22 = arith.addf %18, %21 : vector<256x64xf32>
    %23 = arith.truncf %22 : vector<256x64xf32> to vector<256x64xbf16>
    %c0_19 = arith.constant 0 : index
    %c0_20 = arith.constant 0 : index
    %c0_21 = arith.constant 0 : index
    %24 = vector.load %arg11[%c0_19, %c0_20, %c0_21] : memref<1x256x64xbf16, #tpu.memory_space<vmem>>, vector<1x256x64xbf16>
    %25 = vector.shape_cast %24 : vector<1x256x64xbf16> to vector<256x64xbf16>
    %26 = vector.shape_cast %23 : vector<256x64xbf16> to vector<1x256x64xbf16>
    tpu.vector_store %arg11[%c0_19, %c0_20, %c0_21], %26 {strides = array<i32>} : memref<1x256x64xbf16, #tpu.memory_space<vmem>>, vector<1x256x64xbf16>,
    %c0_22 = arith.constant 0 : index
    %c0_23 = arith.constant 0 : index
    %27 = vector.load %arg9[%c0_22, %c0_23] : memref<64x64xbf16, #tpu.memory_space<vmem>>, vector<64x64xbf16>
    %cst_24 = arith.constant dense<0.000000e+00> : vector<256x64xf32>
    %28 = tpu.matmul %6, %27, %cst_24 {dimension_numbers = #tpu.dot_dimension_numbers<[1], [0], [0], [1], [0, 0, 1, 1], [], []>} : vector<256x64xbf16>, vector<64x64xbf16>, vector<256x64xf32> -> vector<256x64xf32>
    %c0_25 = arith.constant 0 : index
    %c0_26 = arith.constant 0 : index
    %c0_27 = arith.constant 0 : index
    %29 = vector.load %arg6[%c0_25, %c0_26, %c0_27] : memref<1x1x64xf32, #tpu.memory_space<vmem>>, vector<1x1x64xf32>
    %30 = vector.shape_cast %29 : vector<1x1x64xf32> to vector<1x64xf32>
    %31 = vector.broadcast %30 : vector<1x64xf32> to vector<256x64xf32>
    %32 = arith.addf %28, %31 : vector<256x64xf32>
    %33 = arith.truncf %32 : vector<256x64xf32> to vector<256x64xbf16>
    %c0_28 = arith.constant 0 : index
    %c0_29 = arith.constant 0 : index
    %c0_30 = arith.constant 0 : index
    %34 = vector.load %arg12[%c0_28, %c0_29, %c0_30] : memref<1x256x64xbf16, #tpu.memory_space<vmem>>, vector<1x256x64xbf16>
    %35 = vector.shape_cast %34 : vector<1x256x64xbf16> to vector<256x64xbf16>
    %36 = vector.shape_cast %33 : vector<256x64xbf16> to vector<1x256x64xbf16>
    tpu.vector_store %arg12[%c0_28, %c0_29, %c0_30], %36 {strides = array<i32>} : memref<1x256x64xbf16, #tpu.memory_space<vmem>>, vector<1x256x64xbf16>,
    return
  }
  func.func @transform_0(%arg0: i32, %arg1: i32) -> (i32, i32, i32) {
    %c0_i32 = arith.constant 0 : i32
    %c0_i32_0 = arith.constant 0 : i32
    return %arg0, %arg1, %c0_i32 : i32, i32, i32
  }
  func.func @transform_1(%arg0: i32, %arg1: i32) -> (i32, i32, i32) {
    %c0_i32 = arith.constant 0 : i32
    %c0_i32_0 = arith.constant 0 : i32
    %c0_i32_1 = arith.constant 0 : i32
    return %arg0, %c0_i32, %c0_i32_0 : i32, i32, i32
  }
  func.func @transform_2(%arg0: i32, %arg1: i32) -> (i32, i32, i32) {
    %c0_i32 = arith.constant 0 : i32
    %c0_i32_0 = arith.constant 0 : i32
    %c0_i32_1 = arith.constant 0 : i32
    return %arg0, %c0_i32, %c0_i32_0 : i32, i32, i32
  }
  func.func @transform_3(%arg0: i32, %arg1: i32) -> (i32, i32, i32) {
    %c0_i32 = arith.constant 0 : i32
    %c0_i32_0 = arith.constant 0 : i32
    %c0_i32_1 = arith.constant 0 : i32
    return %arg0, %c0_i32, %c0_i32_0 : i32, i32, i32
  }
  func.func @transform_4(%arg0: i32, %arg1: i32) -> (i32, i32, i32) {
    %c0_i32 = arith.constant 0 : i32
    %c0_i32_0 = arith.constant 0 : i32
    %c0_i32_1 = arith.constant 0 : i32
    return %arg0, %c0_i32, %c0_i32_0 : i32, i32, i32
  }
  func.func @transform_5(%arg0: i32, %arg1: i32) -> (i32, i32) {
    %c0_i32 = arith.constant 0 : i32
    %c0_i32_0 = arith.constant 0 : i32
    %c0_i32_1 = arith.constant 0 : i32
    return %c0_i32, %c0_i32_0 : i32, i32
  }
  func.func @transform_6(%arg0: i32, %arg1: i32) -> (i32, i32) {
    %c0_i32 = arith.constant 0 : i32
    %c0_i32_0 = arith.constant 0 : i32
    %c0_i32_1 = arith.constant 0 : i32
    return %c0_i32, %c0_i32_0 : i32, i32
  }
  func.func @transform_7(%arg0: i32, %arg1: i32) -> (i32, i32) {
    %c0_i32 = arith.constant 0 : i32
    %c0_i32_0 = arith.constant 0 : i32
    %c0_i32_1 = arith.constant 0 : i32
    return %c0_i32, %c0_i32_0 : i32, i32
  }
  func.func @transform_8(%arg0: i32, %arg1: i32) -> (i32, i32, i32) {
    %c0_i32 = arith.constant 0 : i32
    %c0_i32_0 = arith.constant 0 : i32
    return %arg0, %arg1, %c0_i32 : i32, i32, i32
  }
  func.func @transform_9(%arg0: i32, %arg1: i32) -> (i32, i32, i32) {
    %c0_i32 = arith.constant 0 : i32
    %c0_i32_0 = arith.constant 0 : i32
    return %arg0, %arg1, %c0_i32 : i32, i32, i32
  }
  func.func @transform_10(%arg0: i32, %arg1: i32) -> (i32, i32, i32) {
    %c0_i32 = arith.constant 0 : i32
    %c0_i32_0 = arith.constant 0 : i32
    return %arg0, %arg1, %c0_i32 : i32, i32, i32
  }
}

</mosaic_0001>

<bundles_post_ra>
// kernel: tpu_custom_call.1
= control target key start
LH: loop header
LB: loop body
LE: loop exit
PB: predicated region body
PF: predicated region fallthrough
CT: control target
= control target key end

     0   :  { %s2521_s13 = smov 0   ;;  %s2523_s14 = smov 0   ;;  %s3077_s0 = inlined_call_operand.vmem [shape: f32[2,256,64], index: 0, kind: input, shape index: {}]   ;;  %s3078_s1 = inlined_call_operand.vmem [shape: f32[2,1,64], index: 1, kind: input, shape index: {}]   ;;  %s3079_s2 = inlined_call_operand.vmem [shape: f32[2,1,64], index: 2, kind: input, shape index: {}]   ;;  %s3080_s3 = inlined_call_operand.vmem [shape: f32[2,1,64], index: 3, kind: input, shape index: {}]   ;;  %s3081_s4 = inlined_call_operand.vmem [shape: f32[2,1,64], index: 4, kind: input, shape index: {}]   ;;  %s3082_s5 = inlined_call_operand.vmem [shape: bf16[64,64], index: 5, kind: input, shape index: {}]   ;;  %s3083_s6 = inlined_call_operand.vmem [shape: bf16[64,64], index: 6, kind: input, shape index: {}]   ;;  %s3084_s7 = inlined_call_operand.vmem [shape: bf16[64,64], index: 7, kind: input, shape index: {}]   ;;  %s3085_s8 = inlined_call_operand.vmem [shape: bf16[2,256,64], index: 8, kind: output, shape index: {0}]   ;;  %s3086_s9 = inlined_call_operand.vmem [shape: bf16[2,256,64], index: 9, kind: output, shape index: {1}]   ;;  %s3087_s10 = inlined_call_operand.vmem [shape: bf16[2,256,64], index: 10, kind: output, shape index: {2}]  }
   0x1   :  { %s2525_s15 = smov 0  }
   0x2 LB: > { %s33_s16 = sadd.s32 1, %s2460_s14  ;;  %p1947_p0 = scmp.ge.s32.totalorder %s2464_s15, 1  ;;  %s2464_s15 = sphi %s2525_s15, %s21_s15   ;;  %s2460_s14 = sphi %s2523_s14, %s3089_s14   ;;  %s2456_s13 = sphi %s2521_s13, %s3088_s13  }
   0x3   : > { %p35_p1 = scmp.ge.s32.totalorder %s33_s16, 2  ;;  %p374_p2 = scmp.lt.s32.totalorder %s2464_s15, 3 }
   0x5   : > { %s3091_s16 = smov (%p35_p1, %s33_s16), 0  ;;  %p375_p3 = pnand %p1947_p0, %p374_p2 }
   0x6   : > { %p451_p4 = scmp.lt.s32.totalorder (!%p375_p3), %s2456_s13, 1 }
   0x7   : > { %378 = sbr.rel (%p375_p3) target bundleno = 322 (0x142), region = 52 }
   0xc   : > { %v2430_v0 = vld [vmem:[%s3082_s5 + $0x18] sm:$0xff]   ;;  %v2431_v1 = vld [vmem:[%s3082_s5 + $0x10] sm:$0xff]   ;;  %s3093_s13 = smov (!%p451_p4, %s2456_s13), 1  ;;  %v2432_v2 = vld [vmem:[%s3082_s5 + $0x8] sm:$0xff]   ;;  %vm629_vm0 = vcmask 523264   ;;  %vm967_vm1 = vcmask 519168  }
   0xd   : > { %2278 = vmatprep.subr.bf16.mxu0 %v2430_v0  ;;  %2398 = vmatprep.subr.bf16.mxu1 %v2430_v0  ;;  %s2118_s23 = sshll.u32 %s3093_s13, 8  ;;  %s462_s26 = scalar_lea.vmem %s3078_s1, %s3093_s13  ;;  %v2433_v13 = vld [vmem:[%s3082_s5] sm:$0xff]   ;;  %v2434_v27 = vld [vmem:[%s3083_s6 + $0x18] sm:$0xff]   ;;  %v2436_v39 = vld [vmem:[%s3083_s6 + $0x10] sm:$0xff]  }
   0xe   : > { %2279 = vmatpush3.bf16.msra.mxu0 %v2430_v0  ;;  %2402 = vmatpush3.bf16.msra.mxu1 %v2430_v0  ;;  %s2558_s29 = scalar_lea.vmem %s3077_s0, %s2118_s23  ;;  %v2560_v3 = vld [vmem:[%s462_s26] ss:$0 sm:$0xff]  ;;  %v2435_v29 = vld [vmem:[%s3084_s7 + $0x18] sm:$0xff]   ;;  %v2437_v48 = vld [vmem:[%s3084_s7 + $0x10] sm:$0xff]   ;;  %s465_s18 = scalar_lea.vmem %s3079_s2, %s3093_s13 }
   0xf   : > { %2280 = vmatprep.subr.bf16.mxu0 %v2431_v1  ;;  %2399 = vmatprep.subr.bf16.mxu1 %v2431_v1  ;;  %v503_v4 = vld [vmem:[%s2558_s29] sm:$0xff]  ;;  %v504_v5 = vld [vmem:[%s2558_s29 + $0x8] sm:$0xff]  ;;  %v505_v11 = vld [vmem:[%s2558_s29 + $0x10] sm:$0xff]  ;;  %s2748_s19 = sshll.u32 %s3093_s13, 7  ;;  %s468_s25 = scalar_lea.vmem %s3080_s3, %s3093_s13 }
  0x10   : > { %v519_v6 = vld [vmem:[%s2558_s29 + $0x80] sm:$0xff]  ;;  %v542_v7 = vmul.f32 %v2560_v3, %v503_v4  ;;  %v543_v8 = vmul.f32 %v2560_v3, %v504_v5  ;;  %v520_v9 = vld [vmem:[%s2558_s29 + $0x88] sm:$0xff]  ;;  %v506_v12 = vld [vmem:[%s2558_s29 + $0x18] sm:$0xff]  ;;  %v544_v18 = vmul.f32 %v2560_v3, %v505_v11  ;;  %s2756_s22 = scalar_lea.vmem %s3085_s8, %s2748_s19  ;;  %s471_s28 = scalar_lea.vmem %s3081_s4, %s3093_s13 }
  0x11   : > { %v558_v10 = vmul.f32 %v2560_v3, %v519_v6  ;;  %v559_v14 = vmul.f32 %v2560_v3, %v520_v9  ;;  %v521_v15 = vld [vmem:[%s2558_s29 + $0x90] sm:$0xff]  ;;  %v522_v16 = vld [vmem:[%s2558_s29 + $0x98] sm:$0xff]  ;;  %v507_v19 = vld [vmem:[%s2558_s29 + $0x20] sm:$0xff]  ;;  %v545_v23 = vmul.f32 %v2560_v3, %v506_v12  ;;  %s2866_s11 = scalar_lea.vmem %s3086_s9, %s2748_s19  ;;  %s2872_s17 = scalar_lea.vmem %s3087_s10, %s2748_s19 }
  0x12   : > { %2281 = vmatpush3.bf16.msra.mxu0 %v2431_v1  ;;  %2403 = vmatpush3.bf16.msra.mxu1 %v2431_v1  ;;  %v2577_v17 = vpack.c.bf16 %v543_v8, %v542_v7  ;;  %v508_v20 = vld [vmem:[%s2558_s29 + $0x28] sm:$0xff]  ;;  %v523_v21 = vld [vmem:[%s2558_s29 + $0xa0] sm:$0xff]  ;;  %v560_v24 = vmul.f32 %v2560_v3, %v521_v15  ;;  %v561_v25 = vmul.f32 %v2560_v3, %v522_v16  ;;  %v509_v33 = vld [vmem:[%s2558_s29 + $0x30] sm:$0xff] }
  0x13   : > { %2282 = vmatprep.subr.bf16.mxu0 %v2432_v2  ;;  %2400 = vmatprep.subr.bf16.mxu1 %v2432_v2  ;;  %v2583_v22 = vpack.c.bf16 %v559_v14, %v558_v10  ;;  %v524_v26 = vld [vmem:[%s2558_s29 + $0xa8] sm:$0xff]  ;;  %v546_v28 = vmul.f32 %v2560_v3, %v507_v19  ;;  %v547_v30 = vmul.f32 %v2560_v3, %v508_v20  ;;  %v510_v36 = vld [vmem:[%s2558_s29 + $0x38] sm:$0xff]  ;;  %v525_v37 = vld [vmem:[%s2558_s29 + $0xb0] sm:$0xff] }
  0x14   : > { %v562_v31 = vmul.f32 %v2560_v3, %v523_v21  ;;  %v563_v32 = vmul.f32 %v2560_v3, %v524_v26  ;;  %2286 = vmatprep.mubr.msk.bf16.mxu0 %vm629_vm0, %v2577_v17  ;;  %v2604_v34 = vpack.c.bf16 %v545_v23, %v544_v18  ;;  %v2606_v35 = vpack.c.bf16 %v561_v25, %v560_v24  ;;  %v526_v38 = vld [vmem:[%s2558_s29 + $0xb8] sm:$0xff]  ;;  %v511_v40 = vld [vmem:[%s2558_s29 + $0x40] sm:$0xff]  ;;  %v512_v41 = vld [vmem:[%s2558_s29 + $0x48] sm:$0xff] }
  0x15   : > { %2302 = vmatprep.mubr.msk.bf16.mxu1 %vm629_vm0, %v2583_v22  ;;  %v527_v42 = vld [vmem:[%s2558_s29 + $0xc0] sm:$0xff]  ;;  %v2617_v43 = vpack.c.bf16 %v547_v30, %v546_v28  ;;  %v528_v45 = vld [vmem:[%s2558_s29 + $0xc8] sm:$0xff]  ;;  %v548_v46 = vmul.f32 %v2560_v3, %v509_v33  ;;  %v549_v47 = vmul.f32 %v2560_v3, %v510_v36  ;;  %v564_v49 = vmul.f32 %v2560_v3, %v525_v37  ;;  %v513_v57 = vld [vmem:[%s2558_s29 + $0x50] sm:$0xff] }
  0x16   : > { %2283 = vmatpush3.bf16.msra.mxu0 %v2432_v2  ;;  %2404 = vmatpush3.bf16.msra.mxu1 %v2432_v2  ;;  %v2619_v44 = vpack.c.bf16 %v563_v32, %v562_v31  ;;  %v565_v50 = vmul.f32 %v2560_v3, %v526_v38  ;;  %v550_v51 = vmul.f32 %v2560_v3, %v511_v40  ;;  %v2438_v55 = vld [vmem:[%s3083_s6 + $0x8] sm:$0xff]   ;;  %v514_v60 = vld [vmem:[%s2558_s29 + $0x58] sm:$0xff]  ;;  %v529_v63 = vld [vmem:[%s2558_s29 + $0xd0] sm:$0xff] }
  0x17   : > { %2284 = vmatprep.subr.bf16.mxu0 %v2433_v13  ;;  %2401 = vmatprep.subr.bf16.mxu1 %v2433_v13  ;;  %v551_v52 = vmul.f32 %v2560_v3, %v512_v41  ;;  %v566_v53 = vmul.f32 %v2560_v3, %v527_v42  ;;  %v567_v54 = vmul.f32 %v2560_v3, %v528_v45  ;;  %v2439_v56 = vld [vmem:[%s3084_s7 + $0x8] sm:$0xff]   ;;  %v530_v0 = vld [vmem:[%s2558_s29 + $0xd8] sm:$0xff]  ;;  %v515_v1 = vld [vmem:[%s2558_s29 + $0x60] sm:$0xff] }
  0x18   : > { %v577_v58 = vpack.c.bf16 %v549_v47, %v548_v46  ;;  %v2648_v59 = vpack.c.bf16 %v565_v50, %v564_v49  ;;  %v516_v2 = vld [vmem:[%s2558_s29 + $0x68] sm:$0xff]  ;;  %v531_v4 = vld [vmem:[%s2558_s29 + $0xe0] sm:$0xff]  ;;  %v552_v6 = vmul.f32 %v2560_v3, %v513_v57  ;;  %v553_v7 = vmul.f32 %v2560_v3, %v514_v60  ;;  %v517_v19 = vld [vmem:[%s2558_s29 + $0x70] sm:$0xff] }
  0x19   : > { %v578_v61 = vpack.c.bf16 %v551_v52, %v550_v51  ;;  %v2651_v62 = vpack.c.bf16 %v567_v54, %v566_v53  ;;  %v532_v5 = vld [vmem:[%s2558_s29 + $0xe8] sm:$0xff]  ;;  %v2440_v8 = vld [vmem:[%s3083_s6] sm:$0xff]   ;;  %v568_v10 = vmul.f32 %v2560_v3, %v529_v63  ;;  %v569_v11 = vmul.f32 %v2560_v3, %v530_v0  ;;  %v518_v23 = vld [vmem:[%s2558_s29 + $0x78] sm:$0xff] }
  0x1a   : > { %2285 = vmatpush3.bf16.msra.mxu0 %v2433_v13  ;;  %2405 = vmatpush3.bf16.msra.mxu1 %v2433_v13  ;;  %v2441_v9 = vld [vmem:[%s3084_s7] sm:$0xff]   ;;  %v554_v12 = vmul.f32 %v2560_v3, %v515_v1  ;;  %v555_v13 = vmul.f32 %v2560_v3, %v516_v2  ;;  %v570_v14 = vmul.f32 %v2560_v3, %v531_v4  ;;  %v533_v24 = vld [vmem:[%s2558_s29 + $0xf0] sm:$0xff]  ;;  %v534_v25 = vld [vmem:[%s2558_s29 + $0xf8] sm:$0xff] }
  0x1b   : > { %2318 = vmatprep.subr.bf16.mxu1 %v2434_v27  ;;  %2358 = vmatprep.subr.bf16.mxu0 %v2435_v29  ;;  %v571_v15 = vmul.f32 %v2560_v3, %v532_v5  ;;  %v579_v16 = vpack.c.bf16 %v553_v7, %v552_v6  ;;  %v587_v18 = vpack.c.bf16 %v569_v11, %v568_v10 }
  0x1c   : > { %v580_v20 = vpack.c.bf16 %v555_v13, %v554_v12  ;;  %v556_v26 = vmul.f32 %v2560_v3, %v517_v19  ;;  %v572_v28 = vmul.f32 %v2560_v3, %v533_v24 }
  0x1d   : > { %2287 = vmatmul.mubr.msk.bf16.vlgmr.msra.gmra.mxu0 %vm629_vm0, %v2604_v34  ;;  %2303 = vmatmul.mubr.msk.bf16.vlgmr.msra.gmra.mxu1 %vm629_vm0, %v2606_v35  ;;  %v588_v21 = vpack.c.bf16 %v571_v15, %v570_v14 }
  0x1e   : > { %2319 = vmatpush3.bf16.msra.mxu1 %v2434_v27  ;;  %2359 = vmatpush3.bf16.msra.mxu0 %v2435_v29  ;;  %v557_v27 = vmul.f32 %v2560_v3, %v518_v23  ;;  %v573_v29 = vmul.f32 %v2560_v3, %v534_v25  ;;  %v2745_v3 = vld [vmem:[%s465_s18] ss:$0 sm:$0xff] }
  0x1f   : > { %2290 = vmatprep.mubr.msk.bf16.mxu0 %vm629_vm0, %v2617_v43  ;;  %2306 = vmatprep.mubr.msk.bf16.mxu1 %vm629_vm0, %v2619_v44 }
  0x20   : > { %2320 = vmatprep.subr.bf16.mxu1 %v2436_v39  ;;  %2360 = vmatprep.subr.bf16.mxu0 %v2437_v48  ;;  %v581_v30 = vpack.c.bf16 %v557_v27, %v556_v26  ;;  %v589_v31 = vpack.c.bf16 %v573_v29, %v572_v28 }
  0x22   : > { %2321 = vmatpush3.bf16.msra.mxu1 %v2436_v39  ;;  %2361 = vmatpush3.bf16.msra.mxu0 %v2437_v48 }
  0x23   : > { %2322 = vmatprep.subr.bf16.mxu1 %v2438_v55  ;;  %2362 = vmatprep.subr.bf16.mxu0 %v2439_v56 }
  0x25   : > { %2291 = vmatmul.mubr.msk.bf16.gmra.mxu0 %vm629_vm0, %v577_v58  ;;  %2307 = vmatmul.mubr.msk.bf16.gmra.mxu1 %vm629_vm0, %v2648_v59 }
  0x26   : > { %2294 = vmatprep.mubr.msk.bf16.mxu0 %vm629_vm0, %v578_v61  ;;  %2310 = vmatprep.mubr.msk.bf16.mxu1 %vm629_vm0, %v2651_v62 }
  0x27   : > { %2323 = vmatpush3.bf16.msra.mxu1 %v2438_v55  ;;  %2363 = vmatpush3.bf16.msra.mxu0 %v2439_v56 }
  0x28   : > { %2324 = vmatprep.subr.bf16.mxu1 %v2440_v8  ;;  %2364 = vmatprep.subr.bf16.mxu0 %v2441_v9 }
  0x2b   : > { %2325 = vmatpush3.bf16.msra.mxu1 %v2440_v8  ;;  %2365 = vmatpush3.bf16.msra.mxu0 %v2441_v9 }
  0x2d   : > { %2295 = vmatmul.mubr.msk.bf16.gmra.mxu0 %vm629_vm0, %v579_v16  ;;  %2311 = vmatmul.mubr.msk.bf16.gmra.mxu1 %vm629_vm0, %v587_v18 }
  0x2e   : > { %2298 = vmatprep.mubr.msk.bf16.mxu0 %vm629_vm0, %v580_v20  ;;  %2314 = vmatprep.mubr.msk.bf16.mxu1 %vm629_vm0, %v588_v21 }
  0x35   : > { %2299 = vmatmul.mubr.msk.bf16.gmra.mxu0 %vm629_vm0, %v581_v30  ;;  %2315 = vmatmul.mubr.msk.bf16.gmra.mxu1 %vm629_vm0, %v589_v31 }
  0x36   : > { %2326 = vmatprep.mubr.msk.bf16.mxu1 %vm629_vm0, %v2577_v17  ;;  %2366 = vmatprep.mubr.msk.bf16.mxu0 %vm629_vm0, %v2577_v17 }
  0x3d   : > { %2327 = vmatmul.mubr.msk.bf16.vlgmr.msra.gmra.mxu1 %vm629_vm0, %v2604_v34  ;;  %2367 = vmatmul.mubr.msk.bf16.vlgmr.msra.gmra.mxu0 %vm629_vm0, %v2604_v34 }
  0x3e   : > { %2330 = vmatprep.mubr.msk.bf16.mxu1 %vm629_vm0, %v2617_v43  ;;  %2370 = vmatprep.mubr.msk.bf16.mxu0 %vm629_vm0, %v2617_v43 }
  0x45   : > { %2331 = vmatmul.mubr.msk.bf16.gmra.mxu1 %vm629_vm0, %v577_v58  ;;  %2371 = vmatmul.mubr.msk.bf16.gmra.mxu0 %vm629_vm0, %v577_v58 }
  0x46   : > { %2334 = vmatprep.mubr.msk.bf16.mxu1 %vm629_vm0, %v578_v61  ;;  %2374 = vmatprep.mubr.msk.bf16.mxu0 %vm629_vm0, %v578_v61 }
  0x4d   : > { %2335 = vmatmul.mubr.msk.bf16.gmra.mxu1 %vm629_vm0, %v579_v16  ;;  %2375 = vmatmul.mubr.msk.bf16.gmra.mxu0 %vm629_vm0, %v579_v16 }
  0x4e   : > { %2338 = vmatprep.mubr.msk.bf16.mxu1 %vm629_vm0, %v580_v20  ;;  %2378 = vmatprep.mubr.msk.bf16.mxu0 %vm629_vm0, %v580_v20 }
  0x55   : > { %2339 = vmatmul.mubr.msk.bf16.gmra.mxu1 %vm629_vm0, %v581_v30  ;;  %2379 = vmatmul.mubr.msk.bf16.gmra.mxu0 %vm629_vm0, %v581_v30 }
  0x56   : > { %2342 = vmatprep.mubr.msk.bf16.mxu1 %vm629_vm0, %v2583_v22  ;;  %2382 = vmatprep.mubr.msk.bf16.mxu0 %vm629_vm0, %v2583_v22 }
  0x5d   : > { %2343 = vmatmul.mubr.msk.bf16.gmra.mxu1 %vm629_vm0, %v2606_v35  ;;  %2383 = vmatmul.mubr.msk.bf16.gmra.mxu0 %vm629_vm0, %v2606_v35 }
  0x5e   : > { %2346 = vmatprep.mubr.msk.bf16.mxu1 %vm629_vm0, %v2619_v44  ;;  %2386 = vmatprep.mubr.msk.bf16.mxu0 %vm629_vm0, %v2619_v44 }
  0x65   : > { %2347 = vmatmul.mubr.msk.bf16.gmra.mxu1 %vm629_vm0, %v2648_v59  ;;  %2387 = vmatmul.mubr.msk.bf16.gmra.mxu0 %vm629_vm0, %v2648_v59 }
  0x66   : > { %2350 = vmatprep.mubr.msk.bf16.mxu1 %vm629_vm0, %v2651_v62  ;;  %2390 = vmatprep.mubr.msk.bf16.mxu0 %vm629_vm0, %v2651_v62 }
  0x6d   : > { %2351 = vmatmul.mubr.msk.bf16.gmra.mxu1 %vm629_vm0, %v587_v18  ;;  %2391 = vmatmul.mubr.msk.bf16.gmra.mxu0 %vm629_vm0, %v587_v18 }
  0x6e   : > { %2354 = vmatprep.mubr.msk.bf16.mxu1 %vm629_vm0, %v588_v21  ;;  %2394 = vmatprep.mubr.msk.bf16.mxu0 %vm629_vm0, %v588_v21 }
  0x75   : > { %2355 = vmatmul.mubr.msk.bf16.gmra.mxu1 %vm629_vm0, %v589_v31  ;;  %2395 = vmatmul.mubr.msk.bf16.gmra.mxu0 %vm629_vm0, %v589_v31 }
  0xdd   : > { %v2288_v17 = vpop.f32.mrf.mxu0  ;;  %v2304_v22 = vpop.f32.mrf.mxu1 }
  0xde   : > { %v721_v32 = vadd.f32 %v2288_v17, %v2745_v3  ;;  %v785_v33 = vadd.f32 %v2304_v22, %v2745_v3 }
  0xdf   : > { %v712_v34 = vpop.f32.mrf.mxu0  ;;  %v776_v35 = vpop.f32.mrf.mxu1 }
  0xe0   : > { %v2124_v36 = vpack.c.bf16 %v721_v32, %v721_v32  ;;  %v2140_v37 = vpack.c.bf16 %v785_v33, %v785_v33  ;;  %v713_v38 = vadd.f32 %v2745_v3, %v712_v34  ;;  %v777_v39 = vadd.f32 %v2745_v3, %v776_v35 }
  0xe1   : > { %v2289_v40 = vpop.f32.mrf.mxu0  ;;  %v2305_v41 = vpop.f32.mrf.mxu1 }
  0xe2   : > { %970 = vst.msk [vmem:[%s2756_s22 + $0x8] sm:$0xf] %vm967_vm1, %v2124_v36  ;;  %986 = vst.msk [vmem:[%s2756_s22 + $0x48] sm:$0xf] %vm967_vm1, %v2140_v37  ;;  %v2122_v42 = vpack.c.bf16 %v713_v38, %v713_v38  ;;  %v2138_v43 = vpack.c.bf16 %v777_v39, %v777_v39  ;;  %v724_v44 = vadd.f32 %v2289_v40, %v2745_v3 }
  0xe3   : > { %v788_v45 = vadd.f32 %v2305_v41, %v2745_v3  ;;  %v715_v46 = vpop.f32.mrf.mxu0  ;;  %v779_v47 = vpop.f32.mrf.mxu1 }
  0xe4   : > { %968 = vst.msk [vmem:[%s2756_s22] sm:$0xf] %vm967_vm1, %v2122_v42  ;;  %984 = vst.msk [vmem:[%s2756_s22 + $0x40] sm:$0xf] %vm967_vm1, %v2138_v43  ;;  %v2125_v48 = vpack.c.bf16 %v724_v44, %v724_v44  ;;  %v716_v50 = vadd.f32 %v2745_v3, %v715_v46  ;;  %v780_v51 = vadd.f32 %v2745_v3, %v779_v47 }
  0xe5   : > { %v2141_v49 = vpack.c.bf16 %v788_v45, %v788_v45  ;;  %v2292_v52 = vpop.f32.mrf.mxu0  ;;  %v2308_v53 = vpop.f32.mrf.mxu1 }
  0xe6   : > { %971 = vst.msk [vmem:[%s2756_s22 + $0xc] sm:$0xf] %vm967_vm1, %v2125_v48  ;;  %v2123_v54 = vpack.c.bf16 %v716_v50, %v716_v50  ;;  %v2139_v55 = vpack.c.bf16 %v780_v51, %v780_v51  ;;  %v737_v56 = vadd.f32 %v2292_v52, %v2745_v3  ;;  %v801_v57 = vadd.f32 %v2308_v53, %v2745_v3 }
  0xe7   : > { %987 = vst.msk [vmem:[%s2756_s22 + $0x4c] sm:$0xf] %vm967_vm1, %v2141_v49  ;;  %v728_v58 = vpop.f32.mrf.mxu0  ;;  %v792_v59 = vpop.f32.mrf.mxu1 }
  0xe8   : > { %969 = vst.msk [vmem:[%s2756_s22 + $0x4] sm:$0xf] %vm967_vm1, %v2123_v54  ;;  %985 = vst.msk [vmem:[%s2756_s22 + $0x44] sm:$0xf] %vm967_vm1, %v2139_v55  ;;  %v2128_v60 = vpack.c.bf16 %v737_v56, %v737_v56  ;;  %v2144_v61 = vpack.c.bf16 %v801_v57, %v801_v57  ;;  %v729_v62 = vadd.f32 %v2745_v3, %v728_v58  ;;  %v2846_v57 = vld [vmem:[%s468_s25] ss:$0 sm:$0xff] }
  0xe9   : > { %v793_v63 = vadd.f32 %v2745_v3, %v792_v59  ;;  %v2293_v0 = vpop.f32.mrf.mxu0  ;;  %v2309_v1 = vpop.f32.mrf.mxu1  ;;  %v2848_v58 = vld [vmem:[%s471_s28] ss:$0 sm:$0xff] }
  0xea   : > { %974 = vst.msk [vmem:[%s2756_s22 + $0x18] sm:$0xf] %vm967_vm1, %v2128_v60  ;;  %990 = vst.msk [vmem:[%s2756_s22 + $0x58] sm:$0xf] %vm967_vm1, %v2144_v61  ;;  %v2126_v2 = vpack.c.bf16 %v729_v62, %v729_v62  ;;  %v740_v5 = vadd.f32 %v2293_v0, %v2745_v3  ;;  %v804_v6 = vadd.f32 %v2309_v1, %v2745_v3 }
  0xeb   : > { %v2142_v4 = vpack.c.bf16 %v793_v63, %v793_v63  ;;  %v731_v7 = vpop.f32.mrf.mxu0  ;;  %v795_v8 = vpop.f32.mrf.mxu1 }
  0xec   : > { %972 = vst.msk [vmem:[%s2756_s22 + $0x10] sm:$0xf] %vm967_vm1, %v2126_v2  ;;  %v2129_v9 = vpack.c.bf16 %v740_v5, %v740_v5  ;;  %v2145_v10 = vpack.c.bf16 %v804_v6, %v804_v6  ;;  %v732_v11 = vadd.f32 %v2745_v3, %v731_v7  ;;  %v796_v12 = vadd.f32 %v2745_v3, %v795_v8 }
  0xed   : > { %988 = vst.msk [vmem:[%s2756_s22 + $0x50] sm:$0xf] %vm967_vm1, %v2142_v4  ;;  %v2296_v13 = vpop.f32.mrf.mxu0  ;;  %v2312_v14 = vpop.f32.mrf.mxu1 }
  0xee   : > { %975 = vst.msk [vmem:[%s2756_s22 + $0x1c] sm:$0xf] %vm967_vm1, %v2129_v9  ;;  %991 = vst.msk [vmem:[%s2756_s22 + $0x5c] sm:$0xf] %vm967_vm1, %v2145_v10  ;;  %v2127_v15 = vpack.c.bf16 %v732_v11, %v732_v11  ;;  %v2143_v16 = vpack.c.bf16 %v796_v12, %v796_v12  ;;  %v753_v18 = vadd.f32 %v2296_v13, %v2745_v3 }
  0xef   : > { %v817_v19 = vadd.f32 %v2312_v14, %v2745_v3  ;;  %v744_v20 = vpop.f32.mrf.mxu0  ;;  %v808_v21 = vpop.f32.mrf.mxu1 }
  0xf0   : > { %973 = vst.msk [vmem:[%s2756_s22 + $0x14] sm:$0xf] %vm967_vm1, %v2127_v15  ;;  %989 = vst.msk [vmem:[%s2756_s22 + $0x54] sm:$0xf] %vm967_vm1, %v2143_v16  ;;  %v2132_v23 = vpack.c.bf16 %v753_v18, %v753_v18  ;;  %v745_v25 = vadd.f32 %v2745_v3, %v744_v20  ;;  %v809_v26 = vadd.f32 %v2745_v3, %v808_v21 }
  0xf1   : > { %v2148_v24 = vpack.c.bf16 %v817_v19, %v817_v19  ;;  %v2297_v27 = vpop.f32.mrf.mxu0  ;;  %v2313_v28 = vpop.f32.mrf.mxu1 }
  0xf2   : > { %978 = vst.msk [vmem:[%s2756_s22 + $0x28] sm:$0xf] %vm967_vm1, %v2132_v23  ;;  %v2130_v29 = vpack.c.bf16 %v745_v25, %v745_v25  ;;  %v2146_v30 = vpack.c.bf16 %v809_v26, %v809_v26  ;;  %v756_v31 = vadd.f32 %v2297_v27, %v2745_v3  ;;  %v820_v17 = vadd.f32 %v2313_v28, %v2745_v3 }
  0xf3   : > { %994 = vst.msk [vmem:[%s2756_s22 + $0x68] sm:$0xf] %vm967_vm1, %v2148_v24  ;;  %v747_v22 = vpop.f32.mrf.mxu0  ;;  %v811_v32 = vpop.f32.mrf.mxu1 }
  0xf4   : > { %976 = vst.msk [vmem:[%s2756_s22 + $0x20] sm:$0xf] %vm967_vm1, %v2130_v29  ;;  %992 = vst.msk [vmem:[%s2756_s22 + $0x60] sm:$0xf] %vm967_vm1, %v2146_v30  ;;  %v2133_v33 = vpack.c.bf16 %v756_v31, %v756_v31  ;;  %v2149_v34 = vpack.c.bf16 %v820_v17, %v820_v17  ;;  %v748_v35 = vadd.f32 %v2745_v3, %v747_v22 }
  0xf5   : > { %v812_v36 = vadd.f32 %v2745_v3, %v811_v32  ;;  %v2300_v37 = vpop.f32.mrf.mxu0  ;;  %v2316_v38 = vpop.f32.mrf.mxu1 }
  0xf6   : > { %979 = vst.msk [vmem:[%s2756_s22 + $0x2c] sm:$0xf] %vm967_vm1, %v2133_v33  ;;  %995 = vst.msk [vmem:[%s2756_s22 + $0x6c] sm:$0xf] %vm967_vm1, %v2149_v34  ;;  %v2131_v39 = vpack.c.bf16 %v748_v35, %v748_v35  ;;  %v769_v41 = vadd.f32 %v2300_v37, %v2745_v3  ;;  %v833_v42 = vadd.f32 %v2316_v38, %v2745_v3 }
  0xf7   : > { %v2147_v40 = vpack.c.bf16 %v812_v36, %v812_v36  ;;  %v760_v43 = vpop.f32.mrf.mxu0  ;;  %v824_v44 = vpop.f32.mrf.mxu1 }
  0xf8   : > { %977 = vst.msk [vmem:[%s2756_s22 + $0x24] sm:$0xf] %vm967_vm1, %v2131_v39  ;;  %v2136_v45 = vpack.c.bf16 %v769_v41, %v769_v41  ;;  %v2152_v46 = vpack.c.bf16 %v833_v42, %v833_v42  ;;  %v761_v47 = vadd.f32 %v2745_v3, %v760_v43  ;;  %v825_v48 = vadd.f32 %v2745_v3, %v824_v44 }
  0xf9   : > { %993 = vst.msk [vmem:[%s2756_s22 + $0x64] sm:$0xf] %vm967_vm1, %v2147_v40  ;;  %v2301_v49 = vpop.f32.mrf.mxu0  ;;  %v2317_v50 = vpop.f32.mrf.mxu1 }
  0xfa   : > { %982 = vst.msk [vmem:[%s2756_s22 + $0x38] sm:$0xf] %vm967_vm1, %v2136_v45  ;;  %998 = vst.msk [vmem:[%s2756_s22 + $0x78] sm:$0xf] %vm967_vm1, %v2152_v46  ;;  %v2134_v51 = vpack.c.bf16 %v761_v47, %v761_v47  ;;  %v2150_v52 = vpack.c.bf16 %v825_v48, %v825_v48  ;;  %v772_v53 = vadd.f32 %v2301_v49, %v2745_v3 }
  0xfb   : > { %v836_v54 = vadd.f32 %v2317_v50, %v2745_v3  ;;  %v763_v55 = vpop.f32.mrf.mxu0  ;;  %v827_v56 = vpop.f32.mrf.mxu1 }
  0xfc   : > { %980 = vst.msk [vmem:[%s2756_s22 + $0x30] sm:$0xf] %vm967_vm1, %v2134_v51  ;;  %996 = vst.msk [vmem:[%s2756_s22 + $0x70] sm:$0xf] %vm967_vm1, %v2150_v52  ;;  %v2137_v59 = vpack.c.bf16 %v772_v53, %v772_v53  ;;  %v764_v61 = vadd.f32 %v2745_v3, %v763_v55  ;;  %v828_v62 = vadd.f32 %v2745_v3, %v827_v56 }
  0xfd   : > { %v2153_v60 = vpack.c.bf16 %v836_v54, %v836_v54  ;;  %v2328_v63 = vpop.f32.mrf.mxu1  ;;  %v2368_v0 = vpop.f32.mrf.mxu0 }
  0xfe   : > { %983 = vst.msk [vmem:[%s2756_s22 + $0x3c] sm:$0xf] %vm967_vm1, %v2137_v59  ;;  %v2135_v1 = vpack.c.bf16 %v764_v61, %v764_v61  ;;  %v2151_v2 = vpack.c.bf16 %v828_v62, %v828_v62  ;;  %v1082_v4 = vadd.f32 %v2328_v63, %v2846_v57  ;;  %v1442_v5 = vadd.f32 %v2368_v0, %v2848_v58 }
  0xff   : > { %999 = vst.msk [vmem:[%s2756_s22 + $0x7c] sm:$0xf] %vm967_vm1, %v2153_v60  ;;  %v1073_v3 = vpop.f32.mrf.mxu1  ;;  %v1433_v6 = vpop.f32.mrf.mxu0 }
 0x100   : > { %981 = vst.msk [vmem:[%s2756_s22 + $0x34] sm:$0xf] %vm967_vm1, %v2135_v1  ;;  %997 = vst.msk [vmem:[%s2756_s22 + $0x74] sm:$0xf] %vm967_vm1, %v2151_v2  ;;  %v2156_v7 = vpack.c.bf16 %v1082_v4, %v1082_v4  ;;  %v2188_v8 = vpack.c.bf16 %v1442_v5, %v1442_v5  ;;  %v1074_v9 = vadd.f32 %v2846_v57, %v1073_v3 }
 0x101   : > { %v1434_v10 = vadd.f32 %v2848_v58, %v1433_v6  ;;  %v2329_v11 = vpop.f32.mrf.mxu1  ;;  %v2369_v12 = vpop.f32.mrf.mxu0 }
 0x102   : > { %1330 = vst.msk [vmem:[%s2866_s11 + $0x8] sm:$0xf] %vm967_vm1, %v2156_v7  ;;  %1690 = vst.msk [vmem:[%s2872_s17 + $0x8] sm:$0xf] %vm967_vm1, %v2188_v8  ;;  %v2154_v13 = vpack.c.bf16 %v1074_v9, %v1074_v9  ;;  %v1085_v15 = vadd.f32 %v2329_v11, %v2846_v57  ;;  %v1445_v16 = vadd.f32 %v2369_v12, %v2848_v58 }
 0x103   : > { %v2186_v14 = vpack.c.bf16 %v1434_v10, %v1434_v10  ;;  %v1076_v18 = vpop.f32.mrf.mxu1  ;;  %v1436_v19 = vpop.f32.mrf.mxu0 }
 0x104   : > { %1328 = vst.msk [vmem:[%s2866_s11] sm:$0xf] %vm967_vm1, %v2154_v13  ;;  %v2157_v20 = vpack.c.bf16 %v1085_v15, %v1085_v15  ;;  %v2189_v21 = vpack.c.bf16 %v1445_v16, %v1445_v16  ;;  %v1077_v23 = vadd.f32 %v2846_v57, %v1076_v18  ;;  %v1437_v24 = vadd.f32 %v2848_v58, %v1436_v19 }
 0x105   : > { %1688 = vst.msk [vmem:[%s2872_s17] sm:$0xf] %vm967_vm1, %v2186_v14  ;;  %v2332_v25 = vpop.f32.mrf.mxu1  ;;  %v2372_v26 = vpop.f32.mrf.mxu0 }
 0x106   : > { %1331 = vst.msk [vmem:[%s2866_s11 + $0xc] sm:$0xf] %vm967_vm1, %v2157_v20  ;;  %1691 = vst.msk [vmem:[%s2872_s17 + $0xc] sm:$0xf] %vm967_vm1, %v2189_v21  ;;  %v2155_v27 = vpack.c.bf16 %v1077_v23, %v1077_v23  ;;  %v2187_v28 = vpack.c.bf16 %v1437_v24, %v1437_v24  ;;  %v1098_v29 = vadd.f32 %v2332_v25, %v2846_v57 }
 0x107   : > { %v1458_v30 = vadd.f32 %v2372_v26, %v2848_v58  ;;  %v1089_v31 = vpop.f32.mrf.mxu1  ;;  %v1449_v17 = vpop.f32.mrf.mxu0 }
 0x108   : > { %1329 = vst.msk [vmem:[%s2866_s11 + $0x4] sm:$0xf] %vm967_vm1, %v2155_v27  ;;  %1689 = vst.msk [vmem:[%s2872_s17 + $0x4] sm:$0xf] %vm967_vm1, %v2187_v28  ;;  %v2160_v22 = vpack.c.bf16 %v1098_v29, %v1098_v29  ;;  %v1090_v33 = vadd.f32 %v2846_v57, %v1089_v31  ;;  %v1450_v34 = vadd.f32 %v2848_v58, %v1449_v17 }
 0x109   : > { %v2192_v32 = vpack.c.bf16 %v1458_v30, %v1458_v30  ;;  %v2333_v35 = vpop.f32.mrf.mxu1  ;;  %v2373_v36 = vpop.f32.mrf.mxu0 }
 0x10a   : > { %1334 = vst.msk [vmem:[%s2866_s11 + $0x18] sm:$0xf] %vm967_vm1, %v2160_v22  ;;  %v2158_v37 = vpack.c.bf16 %v1090_v33, %v1090_v33  ;;  %v2190_v38 = vpack.c.bf16 %v1450_v34, %v1450_v34  ;;  %v1101_v39 = vadd.f32 %v2333_v35, %v2846_v57  ;;  %v1461_v40 = vadd.f32 %v2373_v36, %v2848_v58 }
 0x10b   : > { %1694 = vst.msk [vmem:[%s2872_s17 + $0x18] sm:$0xf] %vm967_vm1, %v2192_v32  ;;  %v1092_v41 = vpop.f32.mrf.mxu1  ;;  %v1452_v42 = vpop.f32.mrf.mxu0 }
 0x10c   : > { %1332 = vst.msk [vmem:[%s2866_s11 + $0x10] sm:$0xf] %vm967_vm1, %v2158_v37  ;;  %1692 = vst.msk [vmem:[%s2872_s17 + $0x10] sm:$0xf] %vm967_vm1, %v2190_v38  ;;  %v2161_v43 = vpack.c.bf16 %v1101_v39, %v1101_v39  ;;  %v2193_v44 = vpack.c.bf16 %v1461_v40, %v1461_v40  ;;  %v1093_v45 = vadd.f32 %v2846_v57, %v1092_v41 }
 0x10d   : > { %v1453_v46 = vadd.f32 %v2848_v58, %v1452_v42  ;;  %v2336_v47 = vpop.f32.mrf.mxu1  ;;  %v2376_v48 = vpop.f32.mrf.mxu0 }
 0x10e   : > { %1335 = vst.msk [vmem:[%s2866_s11 + $0x1c] sm:$0xf] %vm967_vm1, %v2161_v43  ;;  %1695 = vst.msk [vmem:[%s2872_s17 + $0x1c] sm:$0xf] %vm967_vm1, %v2193_v44  ;;  %v2159_v49 = vpack.c.bf16 %v1093_v45, %v1093_v45  ;;  %v1114_v51 = vadd.f32 %v2336_v47, %v2846_v57  ;;  %v1474_v52 = vadd.f32 %v2376_v48, %v2848_v58 }
 0x10f   : > { %v2191_v50 = vpack.c.bf16 %v1453_v46, %v1453_v46  ;;  %v1105_v53 = vpop.f32.mrf.mxu1  ;;  %v1465_v54 = vpop.f32.mrf.mxu0 }
 0x110   : > { %1333 = vst.msk [vmem:[%s2866_s11 + $0x14] sm:$0xf] %vm967_vm1, %v2159_v49  ;;  %v2164_v55 = vpack.c.bf16 %v1114_v51, %v1114_v51  ;;  %v2196_v56 = vpack.c.bf16 %v1474_v52, %v1474_v52  ;;  %v1106_v59 = vadd.f32 %v2846_v57, %v1105_v53  ;;  %v1466_v60 = vadd.f32 %v2848_v58, %v1465_v54 }
 0x111   : > { %1693 = vst.msk [vmem:[%s2872_s17 + $0x14] sm:$0xf] %vm967_vm1, %v2191_v50  ;;  %v2337_v61 = vpop.f32.mrf.mxu1  ;;  %v2377_v62 = vpop.f32.mrf.mxu0 }
 0x112   : > { %1338 = vst.msk [vmem:[%s2866_s11 + $0x28] sm:$0xf] %vm967_vm1, %v2164_v55  ;;  %1698 = vst.msk [vmem:[%s2872_s17 + $0x28] sm:$0xf] %vm967_vm1, %v2196_v56  ;;  %v2162_v63 = vpack.c.bf16 %v1106_v59, %v1106_v59  ;;  %v2194_v0 = vpack.c.bf16 %v1466_v60, %v1466_v60  ;;  %v1117_v1 = vadd.f32 %v2337_v61, %v2846_v57 }
 0x113   : > { %v1477_v2 = vadd.f32 %v2377_v62, %v2848_v58  ;;  %v1108_v4 = vpop.f32.mrf.mxu1  ;;  %v1468_v5 = vpop.f32.mrf.mxu0 }
 0x114   : > { %1336 = vst.msk [vmem:[%s2866_s11 + $0x20] sm:$0xf] %vm967_vm1, %v2162_v63  ;;  %1696 = vst.msk [vmem:[%s2872_s17 + $0x20] sm:$0xf] %vm967_vm1, %v2194_v0  ;;  %v2165_v3 = vpack.c.bf16 %v1117_v1, %v1117_v1  ;;  %v1109_v7 = vadd.f32 %v2846_v57, %v1108_v4  ;;  %v1469_v8 = vadd.f32 %v2848_v58, %v1468_v5 }
 0x115   : > { %v2197_v6 = vpack.c.bf16 %v1477_v2, %v1477_v2  ;;  %v2340_v9 = vpop.f32.mrf.mxu1  ;;  %v2380_v10 = vpop.f32.mrf.mxu0 }
 0x116   : > { %1339 = vst.msk [vmem:[%s2866_s11 + $0x2c] sm:$0xf] %vm967_vm1, %v2165_v3  ;;  %v2163_v11 = vpack.c.bf16 %v1109_v7, %v1109_v7  ;;  %v2195_v12 = vpack.c.bf16 %v1469_v8, %v1469_v8  ;;  %v1130_v13 = vadd.f32 %v2340_v9, %v2846_v57  ;;  %v1490_v14 = vadd.f32 %v2380_v10, %v2848_v58 }
 0x117   : > { %1699 = vst.msk [vmem:[%s2872_s17 + $0x2c] sm:$0xf] %vm967_vm1, %v2197_v6  ;;  %v1121_v15 = vpop.f32.mrf.mxu1  ;;  %v1481_v16 = vpop.f32.mrf.mxu0 }
 0x118   : > { %1337 = vst.msk [vmem:[%s2866_s11 + $0x24] sm:$0xf] %vm967_vm1, %v2163_v11  ;;  %1697 = vst.msk [vmem:[%s2872_s17 + $0x24] sm:$0xf] %vm967_vm1, %v2195_v12  ;;  %v2168_v18 = vpack.c.bf16 %v1130_v13, %v1130_v13  ;;  %v2200_v19 = vpack.c.bf16 %v1490_v14, %v1490_v14  ;;  %v1122_v20 = vadd.f32 %v2846_v57, %v1121_v15 }
 0x119   : > { %v1482_v21 = vadd.f32 %v2848_v58, %v1481_v16  ;;  %v2341_v23 = vpop.f32.mrf.mxu1  ;;  %v2381_v24 = vpop.f32.mrf.mxu0 }
 0x11a   : > { %1342 = vst.msk [vmem:[%s2866_s11 + $0x38] sm:$0xf] %vm967_vm1, %v2168_v18  ;;  %1702 = vst.msk [vmem:[%s2872_s17 + $0x38] sm:$0xf] %vm967_vm1, %v2200_v19  ;;  %v2166_v25 = vpack.c.bf16 %v1122_v20, %v1122_v20  ;;  %v1133_v27 = vadd.f32 %v2341_v23, %v2846_v57  ;;  %v1493_v28 = vadd.f32 %v2381_v24, %v2848_v58 }
 0x11b   : > { %v2198_v26 = vpack.c.bf16 %v1482_v21, %v1482_v21  ;;  %v1124_v29 = vpop.f32.mrf.mxu1  ;;  %v1484_v30 = vpop.f32.mrf.mxu0 }
 0x11c   : > { %1340 = vst.msk [vmem:[%s2866_s11 + $0x30] sm:$0xf] %vm967_vm1, %v2166_v25  ;;  %v2169_v31 = vpack.c.bf16 %v1133_v27, %v1133_v27  ;;  %v2201_v17 = vpack.c.bf16 %v1493_v28, %v1493_v28  ;;  %v1125_v22 = vadd.f32 %v2846_v57, %v1124_v29  ;;  %v1485_v32 = vadd.f32 %v2848_v58, %v1484_v30 }
 0x11d   : > { %1700 = vst.msk [vmem:[%s2872_s17 + $0x30] sm:$0xf] %vm967_vm1, %v2198_v26  ;;  %v2344_v33 = vpop.f32.mrf.mxu1  ;;  %v2384_v34 = vpop.f32.mrf.mxu0 }
 0x11e   : > { %1343 = vst.msk [vmem:[%s2866_s11 + $0x3c] sm:$0xf] %vm967_vm1, %v2169_v31  ;;  %1703 = vst.msk [vmem:[%s2872_s17 + $0x3c] sm:$0xf] %vm967_vm1, %v2201_v17  ;;  %v2167_v35 = vpack.c.bf16 %v1125_v22, %v1125_v22  ;;  %v2199_v36 = vpack.c.bf16 %v1485_v32, %v1485_v32  ;;  %v1146_v37 = vadd.f32 %v2344_v33, %v2846_v57 }
 0x11f   : > { %v1506_v38 = vadd.f32 %v2384_v34, %v2848_v58  ;;  %v1137_v39 = vpop.f32.mrf.mxu1  ;;  %v1497_v40 = vpop.f32.mrf.mxu0 }
 0x120   : > { %1341 = vst.msk [vmem:[%s2866_s11 + $0x34] sm:$0xf] %vm967_vm1, %v2167_v35  ;;  %1701 = vst.msk [vmem:[%s2872_s17 + $0x34] sm:$0xf] %vm967_vm1, %v2199_v36  ;;  %v2172_v41 = vpack.c.bf16 %v1146_v37, %v1146_v37  ;;  %v1138_v43 = vadd.f32 %v2846_v57, %v1137_v39  ;;  %v1498_v44 = vadd.f32 %v2848_v58, %v1497_v40 }
 0x121   : > { %v2204_v42 = vpack.c.bf16 %v1506_v38, %v1506_v38  ;;  %v2345_v45 = vpop.f32.mrf.mxu1  ;;  %v2385_v46 = vpop.f32.mrf.mxu0 }
 0x122   : > { %1346 = vst.msk [vmem:[%s2866_s11 + $0x48] sm:$0xf] %vm967_vm1, %v2172_v41  ;;  %v2170_v47 = vpack.c.bf16 %v1138_v43, %v1138_v43  ;;  %v2202_v48 = vpack.c.bf16 %v1498_v44, %v1498_v44  ;;  %v1149_v49 = vadd.f32 %v2345_v45, %v2846_v57  ;;  %v1509_v50 = vadd.f32 %v2385_v46, %v2848_v58 }
 0x123   : > { %1706 = vst.msk [vmem:[%s2872_s17 + $0x48] sm:$0xf] %vm967_vm1, %v2204_v42  ;;  %v1140_v51 = vpop.f32.mrf.mxu1  ;;  %v1500_v52 = vpop.f32.mrf.mxu0 }
 0x124   : > { %1344 = vst.msk [vmem:[%s2866_s11 + $0x40] sm:$0xf] %vm967_vm1, %v2170_v47  ;;  %1704 = vst.msk [vmem:[%s2872_s17 + $0x40] sm:$0xf] %vm967_vm1, %v2202_v48  ;;  %v2173_v53 = vpack.c.bf16 %v1149_v49, %v1149_v49  ;;  %v2205_v54 = vpack.c.bf16 %v1509_v50, %v1509_v50  ;;  %v1141_v55 = vadd.f32 %v2846_v57, %v1140_v51 }
 0x125   : > { %v1501_v56 = vadd.f32 %v2848_v58, %v1500_v52  ;;  %v2348_v59 = vpop.f32.mrf.mxu1  ;;  %v2388_v60 = vpop.f32.mrf.mxu0 }
 0x126   : > { %1347 = vst.msk [vmem:[%s2866_s11 + $0x4c] sm:$0xf] %vm967_vm1, %v2173_v53  ;;  %1707 = vst.msk [vmem:[%s2872_s17 + $0x4c] sm:$0xf] %vm967_vm1, %v2205_v54  ;;  %v2171_v61 = vpack.c.bf16 %v1141_v55, %v1141_v55  ;;  %v1162_v63 = vadd.f32 %v2348_v59, %v2846_v57  ;;  %v1522_v0 = vadd.f32 %v2388_v60, %v2848_v58 }
 0x127   : > { %v2203_v62 = vpack.c.bf16 %v1501_v56, %v1501_v56  ;;  %v1153_v1 = vpop.f32.mrf.mxu1  ;;  %v1513_v2 = vpop.f32.mrf.mxu0 }
 0x128   : > { %1345 = vst.msk [vmem:[%s2866_s11 + $0x44] sm:$0xf] %vm967_vm1, %v2171_v61  ;;  %v2176_v4 = vpack.c.bf16 %v1162_v63, %v1162_v63  ;;  %v2208_v5 = vpack.c.bf16 %v1522_v0, %v1522_v0  ;;  %v1154_v3 = vadd.f32 %v2846_v57, %v1153_v1  ;;  %v1514_v6 = vadd.f32 %v2848_v58, %v1513_v2 }
 0x129   : > { %1705 = vst.msk [vmem:[%s2872_s17 + $0x44] sm:$0xf] %vm967_vm1, %v2203_v62  ;;  %v2349_v7 = vpop.f32.mrf.mxu1  ;;  %v2389_v8 = vpop.f32.mrf.mxu0 }
 0x12a   : > { %1350 = vst.msk [vmem:[%s2866_s11 + $0x58] sm:$0xf] %vm967_vm1, %v2176_v4  ;;  %1710 = vst.msk [vmem:[%s2872_s17 + $0x58] sm:$0xf] %vm967_vm1, %v2208_v5  ;;  %v2174_v9 = vpack.c.bf16 %v1154_v3, %v1154_v3  ;;  %v2206_v10 = vpack.c.bf16 %v1514_v6, %v1514_v6  ;;  %v1165_v11 = vadd.f32 %v2349_v7, %v2846_v57 }
 0x12b   : > { %v1525_v12 = vadd.f32 %v2389_v8, %v2848_v58  ;;  %v1156_v13 = vpop.f32.mrf.mxu1  ;;  %v1516_v14 = vpop.f32.mrf.mxu0 }
 0x12c   : > { %1348 = vst.msk [vmem:[%s2866_s11 + $0x50] sm:$0xf] %vm967_vm1, %v2174_v9  ;;  %1708 = vst.msk [vmem:[%s2872_s17 + $0x50] sm:$0xf] %vm967_vm1, %v2206_v10  ;;  %v2177_v15 = vpack.c.bf16 %v1165_v11, %v1165_v11  ;;  %v1157_v18 = vadd.f32 %v2846_v57, %v1156_v13  ;;  %v1517_v19 = vadd.f32 %v2848_v58, %v1516_v14 }
 0x12d   : > { %v2209_v16 = vpack.c.bf16 %v1525_v12, %v1525_v12  ;;  %v2352_v20 = vpop.f32.mrf.mxu1  ;;  %v2392_v21 = vpop.f32.mrf.mxu0 }
 0x12e   : > { %1351 = vst.msk [vmem:[%s2866_s11 + $0x5c] sm:$0xf] %vm967_vm1, %v2177_v15  ;;  %v2175_v23 = vpack.c.bf16 %v1157_v18, %v1157_v18  ;;  %v2207_v24 = vpack.c.bf16 %v1517_v19, %v1517_v19  ;;  %v1178_v25 = vadd.f32 %v2352_v20, %v2846_v57  ;;  %v1538_v26 = vadd.f32 %v2392_v21, %v2848_v58 }
 0x12f   : > { %1711 = vst.msk [vmem:[%s2872_s17 + $0x5c] sm:$0xf] %vm967_vm1, %v2209_v16  ;;  %v1169_v27 = vpop.f32.mrf.mxu1  ;;  %v1529_v28 = vpop.f32.mrf.mxu0 }
 0x130   : > { %1349 = vst.msk [vmem:[%s2866_s11 + $0x54] sm:$0xf] %vm967_vm1, %v2175_v23  ;;  %1709 = vst.msk [vmem:[%s2872_s17 + $0x54] sm:$0xf] %vm967_vm1, %v2207_v24  ;;  %v2180_v29 = vpack.c.bf16 %v1178_v25, %v1178_v25  ;;  %v2212_v30 = vpack.c.bf16 %v1538_v26, %v1538_v26  ;;  %v1170_v31 = vadd.f32 %v2846_v57, %v1169_v27 }
 0x131   : > { %v1530_v17 = vadd.f32 %v2848_v58, %v1529_v28  ;;  %v2353_v22 = vpop.f32.mrf.mxu1  ;;  %v2393_v32 = vpop.f32.mrf.mxu0 }
 0x132   : > { %1354 = vst.msk [vmem:[%s2866_s11 + $0x68] sm:$0xf] %vm967_vm1, %v2180_v29  ;;  %1714 = vst.msk [vmem:[%s2872_s17 + $0x68] sm:$0xf] %vm967_vm1, %v2212_v30  ;;  %v2178_v33 = vpack.c.bf16 %v1170_v31, %v1170_v31  ;;  %v1181_v35 = vadd.f32 %v2353_v22, %v2846_v57  ;;  %v1541_v36 = vadd.f32 %v2393_v32, %v2848_v58 }
 0x133   : > { %v2210_v34 = vpack.c.bf16 %v1530_v17, %v1530_v17  ;;  %v1172_v37 = vpop.f32.mrf.mxu1  ;;  %v1532_v38 = vpop.f32.mrf.mxu0 }
 0x134   : > { %1352 = vst.msk [vmem:[%s2866_s11 + $0x60] sm:$0xf] %vm967_vm1, %v2178_v33  ;;  %v2181_v39 = vpack.c.bf16 %v1181_v35, %v1181_v35  ;;  %v2213_v40 = vpack.c.bf16 %v1541_v36, %v1541_v36  ;;  %v1173_v41 = vadd.f32 %v2846_v57, %v1172_v37  ;;  %v1533_v42 = vadd.f32 %v2848_v58, %v1532_v38 }
 0x135   : > { %1712 = vst.msk [vmem:[%s2872_s17 + $0x60] sm:$0xf] %vm967_vm1, %v2210_v34  ;;  %v2356_v43 = vpop.f32.mrf.mxu1  ;;  %v2396_v44 = vpop.f32.mrf.mxu0 }
 0x136   : > { %1355 = vst.msk [vmem:[%s2866_s11 + $0x6c] sm:$0xf] %vm967_vm1, %v2181_v39  ;;  %1715 = vst.msk [vmem:[%s2872_s17 + $0x6c] sm:$0xf] %vm967_vm1, %v2213_v40  ;;  %v2179_v45 = vpack.c.bf16 %v1173_v41, %v1173_v41  ;;  %v2211_v46 = vpack.c.bf16 %v1533_v42, %v1533_v42  ;;  %v1194_v47 = vadd.f32 %v2356_v43, %v2846_v57 }
 0x137   : > { %v1554_v48 = vadd.f32 %v2396_v44, %v2848_v58  ;;  %v1185_v49 = vpop.f32.mrf.mxu1  ;;  %v1545_v50 = vpop.f32.mrf.mxu0 }
 0x138   : > { %1353 = vst.msk [vmem:[%s2866_s11 + $0x64] sm:$0xf] %vm967_vm1, %v2179_v45  ;;  %1713 = vst.msk [vmem:[%s2872_s17 + $0x64] sm:$0xf] %vm967_vm1, %v2211_v46  ;;  %v2184_v51 = vpack.c.bf16 %v1194_v47, %v1194_v47  ;;  %v1186_v53 = vadd.f32 %v2846_v57, %v1185_v49  ;;  %v1546_v54 = vadd.f32 %v2848_v58, %v1545_v50 }
 0x139   : > { %v2216_v52 = vpack.c.bf16 %v1554_v48, %v1554_v48  ;;  %v2357_v55 = vpop.f32.mrf.mxu1  ;;  %v2397_v56 = vpop.f32.mrf.mxu0 }
 0x13a   : > { %1358 = vst.msk [vmem:[%s2866_s11 + $0x78] sm:$0xf] %vm967_vm1, %v2184_v51  ;;  %v2182_v59 = vpack.c.bf16 %v1186_v53, %v1186_v53  ;;  %v2214_v60 = vpack.c.bf16 %v1546_v54, %v1546_v54  ;;  %v1197_v61 = vadd.f32 %v2357_v55, %v2846_v57  ;;  %v1557_v62 = vadd.f32 %v2397_v56, %v2848_v58 }
 0x13b   : > { %1718 = vst.msk [vmem:[%s2872_s17 + $0x78] sm:$0xf] %vm967_vm1, %v2216_v52  ;;  %v1188_v63 = vpop.f32.mrf.mxu1  ;;  %v1548_v0 = vpop.f32.mrf.mxu0 }
 0x13c   : > { %1356 = vst.msk [vmem:[%s2866_s11 + $0x70] sm:$0xf] %vm967_vm1, %v2182_v59  ;;  %1716 = vst.msk [vmem:[%s2872_s17 + $0x70] sm:$0xf] %vm967_vm1, %v2214_v60  ;;  %v2185_v1 = vpack.c.bf16 %v1197_v61, %v1197_v61  ;;  %v2217_v2 = vpack.c.bf16 %v1557_v62, %v1557_v62  ;;  %v1189_v4 = vadd.f32 %v2846_v57, %v1188_v63 }
 0x13d   : > { %v1549_v5 = vadd.f32 %v2848_v58, %v1548_v0 }
 0x13e   : > { %1359 = vst.msk [vmem:[%s2866_s11 + $0x7c] sm:$0xf] %vm967_vm1, %v2185_v1  ;;  %1719 = vst.msk [vmem:[%s2872_s17 + $0x7c] sm:$0xf] %vm967_vm1, %v2217_v2  ;;  %v2183_v3 = vpack.c.bf16 %v1189_v4, %v1189_v4 }
 0x13f   : > { %v2215_v6 = vpack.c.bf16 %v1549_v5, %v1549_v5 }
 0x140   : > { %1357 = vst.msk [vmem:[%s2866_s11 + $0x74] sm:$0xf] %vm967_vm1, %v2183_v3 }
 0x141   : > { %1717 = vst.msk [vmem:[%s2872_s17 + $0x74] sm:$0xf] %vm967_vm1, %v2215_v6 }
 0x142 PF: > { %s21_s15 = sadd.s32 1, %s2464_s15   ;;  %s3088_s13 = smov %s2460_s14 }
 0x143   : > { %p18_p5 = scmp.ge.s32.totalorder %s21_s15, 4   ;;  %s3089_s14 = smov %s3091_s16 }
 0x145   :  { %20 = sbr.rel (!%p18_p5) target bundleno = 2 (0x2), region = 118 }

</bundles_post_ra>
